<compile_context>
chip_gen: v6e
topology: v6e:2x2x1
jax: 0.10.0
libtpu: 0.0.40
codegen_flags: <defaults>
</compile_context>

<pallas_src>
import functools

import jax
import jax.numpy as jnp
from jax.experimental import pallas as pl
from jax.experimental.pallas import tpu as pltpu


def _sigmoid(x):
    return 1.0 / (1.0 + jnp.exp(-x))


# ---------------------------------------------------------------------------
# Generic tiled dense kernel:  out = act(x @ w_t + b)
# ---------------------------------------------------------------------------
def _dense_kernel(x_ref, w_ref, b_ref, o_ref, *, activation):
    y = jnp.dot(x_ref[...], w_ref[...], preferred_element_type=jnp.float32)
    y = y + b_ref[...]
    if activation == "relu":
        y = jnp.maximum(y, 0.0)
    elif activation == "tanh10":
        y = 10.0 * jnp.tanh(y)
    o_ref[...] = y.astype(o_ref.dtype)


def dense(x2d, w_t, b, activation=None, tm=512):
    """x2d: [M, K], w_t: [K, N] (pre-transposed weight), b: [N] or None."""
    M, K = x2d.shape
    N = w_t.shape[1]
    # TM == M (full dim, always legal) or a multiple of 8 capped at 512 rows;
    # 512*K*4B double-buffered is far below scoped VMEM on v5e/v6e/v7x.
    TM = min(tm, M)
    grid = (pl.cdiv(M, TM),)
    if b is None:
        b = jnp.zeros((N,), x2d.dtype)
    b2d = b.reshape(1, N).astype(x2d.dtype)

    return pl.pallas_call(
        functools.partial(_dense_kernel, activation=activation),
        out_shape=jax.ShapeDtypeStruct((M, N), x2d.dtype),
        grid=grid,
        in_specs=[
            pl.BlockSpec((TM, K), lambda i: (i, 0)),
            pl.BlockSpec((K, N), lambda i: (0, 0)),   # weight resident in VMEM
            pl.BlockSpec((1, N), lambda i: (0, 0)),   # bias resident in VMEM
        ],
        out_specs=pl.BlockSpec((TM, N), lambda i: (i, 0)),
        compiler_params=pltpu.CompilerParams(
            dimension_semantics=("parallel",),
        ),
        cost_estimate=pl.CostEstimate(
            flops=2 * M * K * N,
            transcendentals=M * N if activation == "tanh10" else 0,
            bytes_accessed=4 * (M * K + K * N + N + M * N),
        ),
    )(x2d, w_t, b2d)


# ---------------------------------------------------------------------------
# LSTM recurrence kernel: grid over time, h/c carried in VMEM scratch.
# ---------------------------------------------------------------------------
def _lstm_recurrence_kernel(gx_ref, whh_t_ref, out_ref, h_ref, c_ref, *,
                            hidden, apply_relu):
    t = pl.program_id(0)

    @pl.when(t == 0)
    def _init():
        h_ref[...] = jnp.zeros_like(h_ref)
        c_ref[...] = jnp.zeros_like(c_ref)

    h_prev = h_ref[...]
    # [B, 4H] = precomputed x-projection (+ b_ih + b_hh) + recurrent proj.
    gates = gx_ref[0] + jnp.dot(h_prev, whh_t_ref[...],
                                preferred_element_type=jnp.float32)
    H = hidden
    i_g = _sigmoid(gates[:, 0 * H:1 * H])
    f_g = _sigmoid(gates[:, 1 * H:2 * H])
    g_g = jnp.tanh(gates[:, 2 * H:3 * H])
    o_g = _sigmoid(gates[:, 3 * H:4 * H])
    c_new = f_g * c_ref[...] + i_g * g_g
    h_new = o_g * jnp.tanh(c_new)
    c_ref[...] = c_new
    h_ref[...] = h_new
    # activate_func applies to the OUTPUT sequence only; the recurrent state
    # stays un-activated (matches EncoderDecoder).
    y = jnp.maximum(h_new, 0.0) if apply_relu else h_new
    out_ref[0] = y.astype(out_ref.dtype)


def lstm_layer(x_tmajor, w_ih_t, w_hh_t, b, apply_relu):
    """One LSTM layer over a full time-major sequence.

    x_tmajor: [S, B, Din]; w_ih_t: [Din, 4H]; w_hh_t: [H, 4H]; b: [4H].
    Returns [S, B, H].
    """
    S, B, Din = x_tmajor.shape
    H = w_hh_t.shape[0]

    # Fused gate projection for all timesteps at once: [S*B, 4H], lane-dense.
    gx = dense(x_tmajor.reshape(S * B, Din), w_ih_t, b, activation=None)
    gx = gx.reshape(S, B, 4 * H)

    return pl.pallas_call(
        functools.partial(_lstm_recurrence_kernel, hidden=H,
                          apply_relu=apply_relu),
        out_shape=jax.ShapeDtypeStruct((S, B, H), x_tmajor.dtype),
        grid=(S,),
        in_specs=[
            pl.BlockSpec((1, B, 4 * H), lambda t: (t, 0, 0)),
            pl.BlockSpec((H, 4 * H), lambda t: (0, 0)),   # W_hh^T resident
        ],
        out_specs=pl.BlockSpec((1, B, H), lambda t: (t, 0, 0)),
        scratch_shapes=[
            pltpu.VMEM((B, H), jnp.float32),   # h carry
            pltpu.VMEM((B, H), jnp.float32),   # c carry
        ],
        compiler_params=pltpu.CompilerParams(
            dimension_semantics=("arbitrary",),   # sequential recurrence
        ),
        cost_estimate=pl.CostEstimate(
            flops=S * (2 * B * H * 4 * H + 10 * B * H),
            transcendentals=S * B * 6 * H,
            bytes_accessed=4 * (S * B * 4 * H + H * 4 * H + S * B * H),
        ),
    )(gx, w_hh_t)


# ---------------------------------------------------------------------------
# Parameters (PyTorch-style layout) + one-time prep for the kernel path.
# ---------------------------------------------------------------------------
def init_raw_params(key, input_len, hidden_units, num_layers, out_len):
    """Mimics the PyTorch module's parameters (uniform +-1/sqrt(fan))."""
    def uni(k, shape, bound):
        return jax.random.uniform(k, shape, jnp.float32, -bound, bound)

    keys = iter(jax.random.split(key, 256))
    p = {}
    p["w_sa"] = uni(next(keys), (input_len, input_len),
                    1.0 / (input_len ** 0.5))

    modules = []
    prev = input_len
    for H, L in zip(hidden_units, num_layers):
        bound = 1.0 / (H ** 0.5)
        layers = []
        din = prev
        for _ in range(L):
            layers.append(dict(
                w_ih=uni(next(keys), (4 * H, din), bound),
                w_hh=uni(next(keys), (4 * H, H), bound),
                b_ih=uni(next(keys), (4 * H,), bound),
                b_hh=uni(next(keys), (4 * H,), bound),
            ))
            din = H
        modules.append(layers)
        prev = H
    p["lstm_modules"] = modules

    H_last = hidden_units[-1]
    b_fc = 1.0 / (H_last ** 0.5)
    p["w_fc1"] = uni(next(keys), (out_len, H_last), b_fc)
    p["b_fc1"] = uni(next(keys), (out_len,), b_fc)
    return p


def prepare_kernel_params(raw):
    """One-time prep outside the hot path: transpose weights, combine the two
    LSTM biases, and fold the bias-free self_attention Linear into the
    encoder's layer-0 input projection ((x @ Wsa^T) @ Wih^T == x @ (Wih Wsa)^T)."""
    modules = []
    for m, mod in enumerate(raw["lstm_modules"]):
        layers = []
        for li, lp in enumerate(mod):
            w_ih = lp["w_ih"]
            if m == 0 and li == 0:
                w_ih = jnp.dot(w_ih, raw["w_sa"],
                               precision=jax.lax.Precision.HIGHEST)
            layers.append(dict(
                w_ih_t=jnp.asarray(w_ih.T),           # [Din, 4H]
                w_hh_t=jnp.asarray(lp["w_hh"].T),     # [H,   4H]
                b=jnp.asarray(lp["b_ih"] + lp["b_hh"]),
            ))
        modules.append(layers)
    return dict(
        lstm_modules=modules,
        w_fc1_t=jnp.asarray(raw["w_fc1"].T),
        b_fc1=jnp.asarray(raw["b_fc1"]),
    )


# ---------------------------------------------------------------------------
# Full forward pass (Pallas path).
# ---------------------------------------------------------------------------
@functools.partial(jax.jit, static_argnames=("use_relu",))
def forward(params, x, use_relu=True):
    """x: [B, S, input_len] -> (out [B, S, out_len], hidden=None)."""
    B, S, D = x.shape
    # Pad batch to a sublane multiple (8) so second-minor dims are aligned;
    # padded rows are dropped at the end.
    B_pad = -(-B // 8) * 8
    if B_pad != B:
        x = jnp.pad(x, ((0, B_pad - B), (0, 0), (0, 0)))

    h = jnp.transpose(x, (1, 0, 2))            # time-major [S, B_pad, D]
    for mod in params["lstm_modules"]:
        last = len(mod) - 1
        for li, layer in enumerate(mod):
            h = lstm_layer(h, layer["w_ih_t"], layer["w_hh_t"], layer["b"],
                           apply_relu=use_relu and (li == last))

    S_, B_, H_ = h.shape
    out2d = dense(h.reshape(S_ * B_, H_), params["w_fc1_t"], params["b_fc1"],
                  activation="tanh10")          # 10 * tanh(fc1(.)) fused
    out = jnp.transpose(out2d.reshape(S_, B_, -1), (1, 0, 2))[:B]
    # TODO(synk): training-mode inter-layer dropout of nn.LSTM is not modeled
    # (inference semantics; with num_layers == 1 PyTorch would not apply it).
    return out, None


# ---------------------------------------------------------------------------
# Pure-JAX reference (mirrors the PyTorch forward exactly).
# ---------------------------------------------------------------------------
def _lstm_layer_ref(x_tmajor, w_ih, w_hh, b_ih, b_hh):
    S, B, _ = x_tmajor.shape
    H = w_hh.shape[1]

    def step(carry, xt):
        h, c = carry
        gates = xt @ w_ih.T + b_ih + h @ w_hh.T + b_hh
        i = _sigmoid(gates[:, 0 * H:1 * H])
        f = _sigmoid(gates[:, 1 * H:2 * H])
        g = jnp.tanh(gates[:, 2 * H:3 * H])
        o = _sigmoid(gates[:, 3 * H:4 * H])
        c = f * c + i * g
        h = o * jnp.tanh(c)
        return (h, c), h

    init = (jnp.zeros((B, H), x_tmajor.dtype),
            jnp.zeros((B, H), x_tmajor.dtype))
    _, ys = jax.lax.scan(step, init, x_tmajor)
    return ys


def reference_forward(raw, x, use_relu=True):
    with jax.default_matmul_precision("highest"):
        att = x @ raw["w_sa"].T
        h = jnp.transpose(att, (1, 0, 2))
        for mod in raw["lstm_modules"]:
            for lp in mod:
                h = _lstm_layer_ref(h, lp["w_ih"], lp["w_hh"],
                                    lp["b_ih"], lp["b_hh"])
            if use_relu:
                h = jnp.maximum(h, 0.0)
        out = 10.0 * jnp.tanh(h @ raw["w_fc1"].T + raw["b_fc1"])
        return jnp.transpose(out, (1, 0, 2)), None


if __name__ == "__main__":
    # Small config consistent with the module:
    #   input_len=32, hidden_units=[32, 32], num_layers=[1, 1], out_len=32,
    #   activate_func=relu; x: [batch=2, seq=8, input_len=32].
    B, S = 2, 8
    input_len, out_len = 32, 32
    hidden_units = [32, 32]
    num_layers = [1, 1]

    key = jax.random.PRNGKey(0)
    k_par, k_x = jax.random.split(key)
    raw = init_raw_params(k_par, input_len, hidden_units, num_layers, out_len)
    params = prepare_kernel_params(raw)

    x = jax.random.normal(k_x, (B, S, input_len), dtype=jnp.float32)

    out, hidden = forward(params, x, use_relu=True)
    out = jax.block_until_ready(out)

    ref, _ = reference_forward(raw, x, use_relu=True)
    ref = jax.block_until_ready(ref)

    assert hidden is None
    assert out.shape == (B, S, out_len)
    assert bool(jnp.allclose(out, ref, atol=2e-3, rtol=2e-3)), (
        float(jnp.max(jnp.abs(out - ref))))

    print("KERNEL_OK")
</pallas_src>

<mosaic_0001>
module attributes {stable_mosaic.version = 11 : i64} {
  func.func @_lstm_recurrence_kernel(%arg0: i32, %arg1: memref<1x8x128xf32, #tpu.memory_space<vmem>>, %arg2: memref<32x128xf32, #tpu.memory_space<vmem>>, %arg3: memref<1x8x32xf32, #tpu.memory_space<vmem>>, %arg4: memref<8x32xf32, #tpu.memory_space<vmem>>, %arg5: memref<8x32xf32, #tpu.memory_space<vmem>>) attributes {dimension_semantics = [#tpu.dimension_semantics<arbitrary>], iteration_bounds = array<i64: 8>, scalar_prefetch = 0 : i64, scratch_operands = 2 : i64, tpu.core_type = #tpu.core_type<tc>, window_params = [{transform_indices = @transform_0, window_bounds = array<i64: 1, 8, 128>}, {pipeline_mode = #tpu.pipeline_mode<synchronous>, transform_indices = @transform_1, window_bounds = array<i64: 32, 128>}, {transform_indices = @transform_2, window_bounds = array<i64: 1, 8, 32>}]} {
    %c0_i32 = arith.constant 0 : i32
    %0 = arith.cmpi eq, %arg0, %c0_i32 : i32
    %1 = arith.extui %0 : i1 to i32
    %c0_i32_0 = arith.constant 0 : i32
    %2 = arith.cmpi ne, %1, %c0_i32_0 : i32
    scf.if %2 {
      %cst_26 = arith.constant 0.000000e+00 : f32
      %48 = vector.broadcast %cst_26 : f32 to vector<8x32xf32>
      %c0_27 = arith.constant 0 : index
      %c0_28 = arith.constant 0 : index
      %49 = vector.load %arg4[%c0_27, %c0_28] : memref<8x32xf32, #tpu.memory_space<vmem>>, vector<8x32xf32>
      tpu.vector_store %arg4[%c0_27, %c0_28], %48 {strides = array<i32>} : memref<8x32xf32, #tpu.memory_space<vmem>>, vector<8x32xf32>,
      %cst_29 = arith.constant 0.000000e+00 : f32
      %50 = vector.broadcast %cst_29 : f32 to vector<8x32xf32>
      %c0_30 = arith.constant 0 : index
      %c0_31 = arith.constant 0 : index
      %51 = vector.load %arg5[%c0_30, %c0_31] : memref<8x32xf32, #tpu.memory_space<vmem>>, vector<8x32xf32>
      tpu.vector_store %arg5[%c0_30, %c0_31], %50 {strides = array<i32>} : memref<8x32xf32, #tpu.memory_space<vmem>>, vector<8x32xf32>,
    } else {
    }
    %c0 = arith.constant 0 : index
    %c0_1 = arith.constant 0 : index
    %3 = vector.load %arg4[%c0, %c0_1] : memref<8x32xf32, #tpu.memory_space<vmem>>, vector<8x32xf32>
    %c0_2 = arith.constant 0 : index
    %c0_3 = arith.constant 0 : index
    %c0_4 = arith.constant 0 : index
    %4 = vector.load %arg1[%c0_2, %c0_3, %c0_4] : memref<1x8x128xf32, #tpu.memory_space<vmem>>, vector<1x8x128xf32>
    %5 = vector.shape_cast %4 : vector<1x8x128xf32> to vector<8x128xf32>
    %c0_5 = arith.constant 0 : index
    %c0_6 = arith.constant 0 : index
    %6 = vector.load %arg2[%c0_5, %c0_6] : memref<32x128xf32, #tpu.memory_space<vmem>>, vector<32x128xf32>
    %cst = arith.constant dense<0.000000e+00> : vector<8x128xf32>
    %7 = tpu.matmul %3, %6, %cst {dimension_numbers = #tpu.dot_dimension_numbers<[1], [0], [0], [1], [0, 0, 1, 1], [], []>} : vector<8x32xf32>, vector<32x128xf32>, vector<8x128xf32> -> vector<8x128xf32>
    %8 = arith.addf %5, %7 : vector<8x128xf32>
    %9 = vector.extract_strided_slice %8 {offsets = [0, 0], sizes = [8, 32], strides = [1, 1]} : vector<8x128xf32> to vector<8x32xf32>
    %cst_7 = arith.constant 0.000000e+00 : f32
    %10 = vector.broadcast %cst_7 : f32 to vector<8x32xf32>
    %11 = arith.subf %10, %9 : vector<8x32xf32>
    %12 = math.exp %11 : vector<8x32xf32>
    %cst_8 = arith.constant 1.000000e+00 : f32
    %13 = vector.broadcast %cst_8 : f32 to vector<8x32xf32>
    %14 = arith.addf %13, %12 : vector<8x32xf32>
    %cst_9 = arith.constant 1.000000e+00 : f32
    %15 = vector.broadcast %cst_9 : f32 to vector<8x32xf32>
    %16 = arith.divf %15, %14 : vector<8x32xf32>
    %17 = vector.extract_strided_slice %8 {offsets = [0, 32], sizes = [8, 32], strides = [1, 1]} : vector<8x128xf32> to vector<8x32xf32>
    %cst_10 = arith.constant 0.000000e+00 : f32
    %18 = vector.broadcast %cst_10 : f32 to vector<8x32xf32>
    %19 = arith.subf %18, %17 : vector<8x32xf32>
    %20 = math.exp %19 : vector<8x32xf32>
    %cst_11 = arith.constant 1.000000e+00 : f32
    %21 = vector.broadcast %cst_11 : f32 to vector<8x32xf32>
    %22 = arith.addf %21, %20 : vector<8x32xf32>
    %cst_12 = arith.constant 1.000000e+00 : f32
    %23 = vector.broadcast %cst_12 : f32 to vector<8x32xf32>
    %24 = arith.divf %23, %22 : vector<8x32xf32>
    %25 = vector.extract_strided_slice %8 {offsets = [0, 64], sizes = [8, 32], strides = [1, 1]} : vector<8x128xf32> to vector<8x32xf32>
    %26 = math.tanh %25 : vector<8x32xf32>
    %27 = vector.extract_strided_slice %8 {offsets = [0, 96], sizes = [8, 32], strides = [1, 1]} : vector<8x128xf32> to vector<8x32xf32>
    %cst_13 = arith.constant 0.000000e+00 : f32
    %28 = vector.broadcast %cst_13 : f32 to vector<8x32xf32>
    %29 = arith.subf %28, %27 : vector<8x32xf32>
    %30 = math.exp %29 : vector<8x32xf32>
    %cst_14 = arith.constant 1.000000e+00 : f32
    %31 = vector.broadcast %cst_14 : f32 to vector<8x32xf32>
    %32 = arith.addf %31, %30 : vector<8x32xf32>
    %cst_15 = arith.constant 1.000000e+00 : f32
    %33 = vector.broadcast %cst_15 : f32 to vector<8x32xf32>
    %34 = arith.divf %33, %32 : vector<8x32xf32>
    %c0_16 = arith.constant 0 : index
    %c0_17 = arith.constant 0 : index
    %35 = vector.load %arg5[%c0_16, %c0_17] : memref<8x32xf32, #tpu.memory_space<vmem>>, vector<8x32xf32>
    %36 = arith.mulf %24, %35 : vector<8x32xf32>
    %37 = arith.mulf %16, %26 : vector<8x32xf32>
    %38 = arith.addf %36, %37 : vector<8x32xf32>
    %39 = math.tanh %38 : vector<8x32xf32>
    %40 = arith.mulf %34, %39 : vector<8x32xf32>
    %c0_18 = arith.constant 0 : index
    %c0_19 = arith.constant 0 : index
    %41 = vector.load %arg5[%c0_18, %c0_19] : memref<8x32xf32, #tpu.memory_space<vmem>>, vector<8x32xf32>
    tpu.vector_store %arg5[%c0_18, %c0_19], %38 {strides = array<i32>} : memref<8x32xf32, #tpu.memory_space<vmem>>, vector<8x32xf32>,
    %c0_20 = arith.constant 0 : index
    %c0_21 = arith.constant 0 : index
    %42 = vector.load %arg4[%c0_20, %c0_21] : memref<8x32xf32, #tpu.memory_space<vmem>>, vector<8x32xf32>
    tpu.vector_store %arg4[%c0_20, %c0_21], %40 {strides = array<i32>} : memref<8x32xf32, #tpu.memory_space<vmem>>, vector<8x32xf32>,
    %cst_22 = arith.constant 0.000000e+00 : f32
    %43 = vector.broadcast %cst_22 : f32 to vector<8x32xf32>
    %44 = arith.maximumf %40, %43 : vector<8x32xf32>
    %c0_23 = arith.constant 0 : index
    %c0_24 = arith.constant 0 : index
    %c0_25 = arith.constant 0 : index
    %45 = vector.load %arg3[%c0_23, %c0_24, %c0_25] : memref<1x8x32xf32, #tpu.memory_space<vmem>>, vector<1x8x32xf32>
    %46 = vector.shape_cast %45 : vector<1x8x32xf32> to vector<8x32xf32>
    %47 = vector.shape_cast %44 : vector<8x32xf32> to vector<1x8x32xf32>
    tpu.vector_store %arg3[%c0_23, %c0_24, %c0_25], %47 {strides = array<i32>} : memref<1x8x32xf32, #tpu.memory_space<vmem>>, vector<1x8x32xf32>,
    return
  }
  func.func @transform_0(%arg0: i32) -> (i32, i32, i32) {
    %c0_i32 = arith.constant 0 : i32
    %c0_i32_0 = arith.constant 0 : i32
    %c0_i32_1 = arith.constant 0 : i32
    return %arg0, %c0_i32, %c0_i32_0 : i32, i32, i32
  }
  func.func @transform_1(%arg0: i32) -> (i32, i32) {
    %c0_i32 = arith.constant 0 : i32
    %c0_i32_0 = arith.constant 0 : i32
    %c0_i32_1 = arith.constant 0 : i32
    return %c0_i32, %c0_i32_0 : i32, i32
  }
  func.func @transform_2(%arg0: i32) -> (i32, i32, i32) {
    %c0_i32 = arith.constant 0 : i32
    %c0_i32_0 = arith.constant 0 : i32
    %c0_i32_1 = arith.constant 0 : i32
    return %arg0, %c0_i32, %c0_i32_0 : i32, i32, i32
  }
}

module attributes {stable_mosaic.version = 11 : i64} {
  func.func @_dense_kernel(%arg0: i32, %arg1: memref<64x32xf32, #tpu.memory_space<vmem>>, %arg2: memref<32x128xf32, #tpu.memory_space<vmem>>, %arg3: memref<1x128xf32, #tpu.memory_space<vmem>>, %arg4: memref<64x128xf32, #tpu.memory_space<vmem>>) attributes {dimension_semantics = [#tpu.dimension_semantics<parallel>], iteration_bounds = array<i64: 1>, scalar_prefetch = 0 : i64, scratch_operands = 0 : i64, tpu.core_type = #tpu.core_type<tc>, window_params = [{transform_indices = @transform_0, window_bounds = array<i64: 64, 32>}, {pipeline_mode = #tpu.pipeline_mode<synchronous>, transform_indices = @transform_1, window_bounds = array<i64: 32, 128>}, {pipeline_mode = #tpu.pipeline_mode<synchronous>, transform_indices = @transform_2, window_bounds = array<i64: 1, 128>}, {transform_indices = @transform_3, window_bounds = array<i64: 64, 128>}]} {
    %c0 = arith.constant 0 : index
    %c0_0 = arith.constant 0 : index
    %0 = vector.load %arg1[%c0, %c0_0] : memref<64x32xf32, #tpu.memory_space<vmem>>, vector<64x32xf32>
    %c0_1 = arith.constant 0 : index
    %c0_2 = arith.constant 0 : index
    %1 = vector.load %arg2[%c0_1, %c0_2] : memref<32x128xf32, #tpu.memory_space<vmem>>, vector<32x128xf32>
    %cst = arith.constant dense<0.000000e+00> : vector<64x128xf32>
    %2 = tpu.matmul %0, %1, %cst {dimension_numbers = #tpu.dot_dimension_numbers<[1], [0], [0], [1], [0, 0, 1, 1], [], []>} : vector<64x32xf32>, vector<32x128xf32>, vector<64x128xf32> -> vector<64x128xf32>
    %c0_3 = arith.constant 0 : index
    %c0_4 = arith.constant 0 : index
    %3 = vector.load %arg3[%c0_3, %c0_4] : memref<1x128xf32, #tpu.memory_space<vmem>>, vector<1x128xf32>
    %4 = vector.broadcast %3 : vector<1x128xf32> to vector<64x128xf32>
    %5 = arith.addf %2, %4 : vector<64x128xf32>
    %c0_5 = arith.constant 0 : index
    %c0_6 = arith.constant 0 : index
    %6 = vector.load %arg4[%c0_5, %c0_6] : memref<64x128xf32, #tpu.memory_space<vmem>>, vector<64x128xf32>
    tpu.vector_store %arg4[%c0_5, %c0_6], %5 {strides = array<i32>} : memref<64x128xf32, #tpu.memory_space<vmem>>, vector<64x128xf32>,
    return
  }
  func.func @transform_0(%arg0: i32) -> (i32, i32) {
    %c0_i32 = arith.constant 0 : i32
    %c0_i32_0 = arith.constant 0 : i32
    return %arg0, %c0_i32 : i32, i32
  }
  func.func @transform_1(%arg0: i32) -> (i32, i32) {
    %c0_i32 = arith.constant 0 : i32
    %c0_i32_0 = arith.constant 0 : i32
    %c0_i32_1 = arith.constant 0 : i32
    return %c0_i32, %c0_i32_0 : i32, i32
  }
  func.func @transform_2(%arg0: i32) -> (i32, i32) {
    %c0_i32 = arith.constant 0 : i32
    %c0_i32_0 = arith.constant 0 : i32
    %c0_i32_1 = arith.constant 0 : i32
    return %c0_i32, %c0_i32_0 : i32, i32
  }
  func.func @transform_3(%arg0: i32) -> (i32, i32) {
    %c0_i32 = arith.constant 0 : i32
    %c0_i32_0 = arith.constant 0 : i32
    return %arg0, %c0_i32 : i32, i32
  }
}

module attributes {stable_mosaic.version = 11 : i64} {
  func.func @_dense_kernel(%arg0: i32, %arg1: memref<64x32xf32, #tpu.memory_space<vmem>>, %arg2: memref<32x32xf32, #tpu.memory_space<vmem>>, %arg3: memref<1x32xf32, #tpu.memory_space<vmem>>, %arg4: memref<64x32xf32, #tpu.memory_space<vmem>>) attributes {dimension_semantics = [#tpu.dimension_semantics<parallel>], iteration_bounds = array<i64: 1>, scalar_prefetch = 0 : i64, scratch_operands = 0 : i64, tpu.core_type = #tpu.core_type<tc>, window_params = [{transform_indices = @transform_0, window_bounds = array<i64: 64, 32>}, {pipeline_mode = #tpu.pipeline_mode<synchronous>, transform_indices = @transform_1, window_bounds = array<i64: 32, 32>}, {pipeline_mode = #tpu.pipeline_mode<synchronous>, transform_indices = @transform_2, window_bounds = array<i64: 1, 32>}, {transform_indices = @transform_3, window_bounds = array<i64: 64, 32>}]} {
    %c0 = arith.constant 0 : index
    %c0_0 = arith.constant 0 : index
    %0 = vector.load %arg1[%c0, %c0_0] : memref<64x32xf32, #tpu.memory_space<vmem>>, vector<64x32xf32>
    %c0_1 = arith.constant 0 : index
    %c0_2 = arith.constant 0 : index
    %1 = vector.load %arg2[%c0_1, %c0_2] : memref<32x32xf32, #tpu.memory_space<vmem>>, vector<32x32xf32>
    %cst = arith.constant dense<0.000000e+00> : vector<64x32xf32>
    %2 = tpu.matmul %0, %1, %cst {dimension_numbers = #tpu.dot_dimension_numbers<[1], [0], [0], [1], [0, 0, 1, 1], [], []>} : vector<64x32xf32>, vector<32x32xf32>, vector<64x32xf32> -> vector<64x32xf32>
    %c0_3 = arith.constant 0 : index
    %c0_4 = arith.constant 0 : index
    %3 = vector.load %arg3[%c0_3, %c0_4] : memref<1x32xf32, #tpu.memory_space<vmem>>, vector<1x32xf32>
    %4 = vector.broadcast %3 : vector<1x32xf32> to vector<64x32xf32>
    %5 = arith.addf %2, %4 : vector<64x32xf32>
    %6 = math.tanh %5 : vector<64x32xf32>
    %cst_5 = arith.constant 1.000000e+01 : f32
    %7 = vector.broadcast %cst_5 : f32 to vector<64x32xf32>
    %8 = arith.mulf %7, %6 : vector<64x32xf32>
    %c0_6 = arith.constant 0 : index
    %c0_7 = arith.constant 0 : index
    %9 = vector.load %arg4[%c0_6, %c0_7] : memref<64x32xf32, #tpu.memory_space<vmem>>, vector<64x32xf32>
    tpu.vector_store %arg4[%c0_6, %c0_7], %8 {strides = array<i32>} : memref<64x32xf32, #tpu.memory_space<vmem>>, vector<64x32xf32>,
    return
  }
  func.func @transform_0(%arg0: i32) -> (i32, i32) {
    %c0_i32 = arith.constant 0 : i32
    %c0_i32_0 = arith.constant 0 : i32
    return %arg0, %c0_i32 : i32, i32
  }
  func.func @transform_1(%arg0: i32) -> (i32, i32) {
    %c0_i32 = arith.constant 0 : i32
    %c0_i32_0 = arith.constant 0 : i32
    %c0_i32_1 = arith.constant 0 : i32
    return %c0_i32, %c0_i32_0 : i32, i32
  }
  func.func @transform_2(%arg0: i32) -> (i32, i32) {
    %c0_i32 = arith.constant 0 : i32
    %c0_i32_0 = arith.constant 0 : i32
    %c0_i32_1 = arith.constant 0 : i32
    return %c0_i32, %c0_i32_0 : i32, i32
  }
  func.func @transform_3(%arg0: i32) -> (i32, i32) {
    %c0_i32 = arith.constant 0 : i32
    %c0_i32_0 = arith.constant 0 : i32
    return %arg0, %c0_i32 : i32, i32
  }
}

</mosaic_0001>

<bundles_post_ra>
// kernel: forward.6
= control target key start
LH: loop header
LB: loop body
LE: loop exit
PB: predicated region body
PF: predicated region fallthrough
CT: control target
= control target key end

     0   :  { %s403_s9 = smov 0   ;;  %s439_s0 = inlined_call_operand.vmem [shape: f32[8,8,128], index: 0, kind: input, shape index: {}]   ;;  %s440_s1 = inlined_call_operand.vmem [shape: f32[32,128], index: 1, kind: input, shape index: {}]   ;;  %s441_s2 = inlined_call_operand.vmem [shape: f32[8,8,32], index: 2, kind: output, shape index: {}]  }
   0x1 LB: > { %s325_s10 = sadd.s32 4294967295, %s380_s9   ;;  %p329_p0 = scmp.ge.s32.totalorder %s380_s9, 1  ;;  %s380_s9 = sphi %s403_s9, %s12_s9  }
   0x2   : > { %p111_p1 = scmp.lt.s32.totalorder %s380_s9, 9 }
   0x4   : > { %p112_p2 = pnand %p329_p0, %p111_p1 }
   0x5   : > { %p131_p3 = scmp.lt.s32.totalorder (!%p112_p2), %s325_s10, 7  ;;  %p332_p4 = scmp.ne.s32.totalorder (!%p112_p2), %s325_s10, 0 }
   0x6   : > { %115 = sbr.rel (%p112_p2) target bundleno = 720 (0x2d0), region = 28 }
   0xb   : > { %s132_s11 = scalar_select %p131_p3, %s325_s10, 7 }
   0xc   : > { %142 = sbr.rel (%p332_p4) target bundleno = 19 (0x13), region = 32 }
   0xd   : > { %s330_s12 = sshll.u32 %s132_s11, 3 }
   0xe   : > { %s134_s15 = scalar_lea.vmem %s439_s0, %s330_s12  ;;  %s417_s18 = scalar_lea.vmem %s441_s2, %s330_s12 }
  0x11   : > { %vm143_vm0 = vcmask 261120   ;;  %v382_v0 = vmov 0.0  }
  0x12   : > { %144 = vst.msk [vmem:[#allocation2] sm:$0xff] %vm143_vm0, %v382_v0  ;;  %145 = vst.msk [vmem:[#allocation3] sm:$0xff] %vm143_vm0, %v382_v0 }
  0x13 PF: > { %v151_v1 = vld [vmem:[%s440_s1 + $0x18] sm:$0xff]  ;;  %v383_v2 = vmov 0.0   ;;  %v150_v3 = vld [vmem:[%s440_s1 + $0x10] sm:$0xff]  ;;  %vm384_vm1 = vmmov 0   ;;  %v149_v4 = vld [vmem:[%s440_s1 + $0x8] sm:$0xff]  ;;  %vm152_vm2 = vcmask 261120  }
  0x14   : > { %341 = vmatprep.subr.mxu0 %v383_v2  ;;  %349 = vmatprep.mubr.msk.f32.mxu0 %vm384_vm1, %v383_v2  ;;  %v148_v5 = vld [vmem:[%s440_s1] sm:$0xff]  ;;  %s385_s27 = smov 64   ;;  %s386_s28 = smov 32  }
  0x15   : > { %342 = vmatpush3.msra.mxu0 %v151_v1  ;;  %v147_v7 = vld [vmem:[%s134_s15] sm:$0xff]  ;;  %s387_s29 = smov 96  }
  0x16   : > { %343 = vmatprep.subr.mxu0 %v383_v2 }
  0x17   : > { %344 = vmatpush3.msra.mxu0 %v150_v3 }
  0x18   : > { %345 = vmatprep.subr.mxu0 %v383_v2 }
  0x19   : > { %346 = vmatpush3.msra.mxu0 %v149_v4  ;;  %v146_v6 = vld [vmem:[#allocation2] sm:$0xff]  ;;  %v234_v12 = vld [vmem:[#allocation3] sm:$0xff] }
  0x1a   : > { %347 = vmatprep.subr.mxu0 %v383_v2 }
  0x1b   : > { %348 = vmatpush3.msra.mxu0 %v148_v5 }
  0x1c   : > { %350 = vmatmul.mubr.msk.f32.vlgmr.msra.gmra.mxu0 %vm152_vm2, %v146_v6 }
  0xdc   : > { %v222_v8 = vpop.f32.mrf.mxu0 }
  0xdd   : > { %v226_v9 = vadd.f32 %v222_v8, %v147_v7 }
  0xde   : > { %v351_v10 = vpop.f32.mrf.mxu0 }
  0xdf   : > { %366 = vtanh.f32 %v226_v9  ;;  %v227_v13 = vsub.f32 0.0, %v226_v9 }
  0xe1   : > { %v228_v14 = vmul.f32 1.442695, %v227_v13 }
  0xe3   : > { %368 = vpow2.f32 %v228_v14 }
  0xec   : > { %v367_v11 = vpop.eup %366 }
  0xed   : > { %241 = vrot.lane.b32.xlu0 %v367_v11, %s385_s27 }
  0xf0   : > { %v369_v15 = vpop.eup %368 }
  0xf1   : > { %236 = vrot.lane.b32.xlu0 %v234_v12, %s386_s28  ;;  %v230_v16 = vadd.f32 1.0, %v369_v15 }
  0xf3   : > { %370 = vrcp.f32 %v230_v16 }
 0x100   : > { %v371_v17 = vpop.eup %370 }
 0x15f   : > { %v242_v18 = vpop.permute.xlu0 %241 }
 0x160   : > { %v244_v19 = vmul.f32 %v371_v17, %v242_v18 }
 0x162   : > { %246 = vrot.lane.b32.xlu1 %v244_v19, %s386_s28 }
 0x163   : > { %v237_v20 = vpop.permute.xlu0 %236 }
 0x164   : > { %v239_v21 = vmul.f32 %v371_v17, %v237_v20 }
 0x1d4   : > { %v247_v22 = vpop.permute.xlu1 %246 }
 0x1d5   : > { %v249_v23 = vadd.f32 %v247_v22, %v239_v21 }
 0x1d7   : > { %372 = vtanh.f32 %v249_v23  ;;  %257 = vrot.lane.b32.xlu0 %v249_v23, %s387_s29 }
 0x1e4   : > { %v373_v24 = vpop.eup %372 }
 0x1e5   : > { %252 = vrot.lane.b32.xlu1 %v373_v24, %s385_s27 }
 0x249   : > { %v258_v25 = vpop.permute.xlu0 %257 }
 0x24a   : > { %260 = vst.msk [vmem:[#allocation3] sm:$0xff] %vm152_vm2, %v258_v25 }
 0x257   : > { %v253_v26 = vpop.permute.xlu1 %252 }
 0x258   : > { %v255_v27 = vmul.f32 %v371_v17, %v253_v26 }
 0x25a   : > { %v266_v28 = vmax.f32 %v255_v27, 0.0  ;;  %262 = vrot.lane.b32.xlu1 %v255_v27, %s386_s28 }
 0x25c   : > { %268 = vrot.lane.b32.xlu0 %v266_v28, %s386_s28 }
 0x2cc   : > { %v263_v29 = vpop.permute.xlu1 %262 }
 0x2cd   : > { %265 = vst.msk [vmem:[#allocation2] sm:$0xff] %vm152_vm2, %v263_v29 }
 0x2ce   : > { %v269_v30 = vpop.permute.xlu0 %268 }
 0x2cf   : > { %271 = vst.msk [vmem:[%s417_s18] sm:$0xff] %vm152_vm2, %v269_v30 }
 0x2d0 PF: > { %s12_s9 = sadd.s32 1, %s380_s9  }
 0x2d1   : > { %p9_p5 = scmp.ge.s32.totalorder %s12_s9, 10  }
 0x2d3   :  { %11 = sbr.rel (!%p9_p5) target bundleno = 1 (0x1), region = 62 }

// kernel: forward.5
= control target key start
LH: loop header
LB: loop body
LE: loop exit
PB: predicated region body
PF: predicated region fallthrough
CT: control target
= control target key end

     0   :  { %vm33_vm0 = vcmask 261120   ;;  %s315_s1 = inlined_call_operand.vmem [shape: f32[32,128], index: 1, kind: input, shape index: {}]   ;;  %s316_s0 = inlined_call_operand.vmem [shape: f32[64,32], index: 0, kind: input, shape index: {}]   ;;  %s317_s2 = inlined_call_operand.vmem [shape: f32[1,128], index: 2, kind: input, shape index: {}]   ;;  %s318_s3 = inlined_call_operand.vmem [shape: f32[64,128], index: 3, kind: output, shape index: {}]  }
   0x1   :  { %v25_v0 = vld [vmem:[%s315_s1 + $0x18] sm:$0xff]  ;;  %v24_v1 = vld [vmem:[%s315_s1 + $0x10] sm:$0xff]  ;;  %v23_v2 = vld [vmem:[%s315_s1 + $0x8] sm:$0xff] }
   0x2   :  { %196 = vmatprep.subr.mxu0 %v25_v0  ;;  %216 = vmatprep.subr.mxu1 %v25_v0  ;;  %v22_v3 = vld [vmem:[%s315_s1] sm:$0xff]  ;;  %v15_v6 = vld [vmem:[%s316_s0 + $0x8] sm:$0xff]  ;;  %v16_v8 = vld [vmem:[%s316_s0 + $0x10] sm:$0xff] }
   0x3   :  { %197 = vmatpush3.msra.mxu0 %v25_v0  ;;  %220 = vmatpush3.msra.mxu1 %v25_v0  ;;  %v14_v4 = vld [vmem:[%s316_s0] sm:$0xff]  ;;  %v19_v7 = vld [vmem:[%s316_s0 + $0x28] sm:$0xff]  ;;  %v20_v9 = vld [vmem:[%s316_s0 + $0x30] sm:$0xff] }
   0x4   :  { %198 = vmatprep.subr.mxu0 %v24_v1  ;;  %217 = vmatprep.subr.mxu1 %v24_v1  ;;  %v18_v5 = vld [vmem:[%s316_s0 + $0x20] sm:$0xff]  ;;  %v17_v10 = vld [vmem:[%s316_s0 + $0x18] sm:$0xff] }
   0x5   :  { %199 = vmatpush3.msra.mxu0 %v24_v1  ;;  %221 = vmatpush3.msra.mxu1 %v24_v1  ;;  %v21_v11 = vld [vmem:[%s316_s0 + $0x38] sm:$0xff]  ;;  %v175_v12 = vld [vmem:[%s317_s2] ss:$0 sm:$0xff] }
   0x6   :  { %200 = vmatprep.subr.mxu0 %v23_v2  ;;  %218 = vmatprep.subr.mxu1 %v23_v2 }
   0x7   :  { %201 = vmatpush3.msra.mxu0 %v23_v2  ;;  %222 = vmatpush3.msra.mxu1 %v23_v2 }
   0x8   :  { %202 = vmatprep.subr.mxu0 %v22_v3  ;;  %219 = vmatprep.subr.mxu1 %v22_v3 }
   0x9   :  { %203 = vmatpush3.msra.mxu0 %v22_v3  ;;  %223 = vmatpush3.msra.mxu1 %v22_v3 }
   0xa   :  { %204 = vmatprep.mubr.msk.f32.mxu0 %vm33_vm0, %v14_v4  ;;  %210 = vmatprep.mubr.msk.f32.mxu1 %vm33_vm0, %v18_v5 }
   0xb   :  { %205 = vmatmul.mubr.msk.f32.vlgmr.msra.gmra.mxu0 %vm33_vm0, %v15_v6  ;;  %211 = vmatmul.mubr.msk.f32.vlgmr.msra.gmra.mxu1 %vm33_vm0, %v19_v7 }
   0xc   :  { %207 = vmatprep.mubr.msk.f32.mxu0 %vm33_vm0, %v16_v8  ;;  %213 = vmatprep.mubr.msk.f32.mxu1 %vm33_vm0, %v20_v9 }
   0xf   :  { %208 = vmatmul.mubr.msk.f32.gmra.mxu0 %vm33_vm0, %v17_v10  ;;  %214 = vmatmul.mubr.msk.f32.gmra.mxu1 %vm33_vm0, %v21_v11 }
  0xcb   :  { %v206_v13 = vpop.f32.mrf.mxu0  ;;  %v212_v14 = vpop.f32.mrf.mxu1 }
  0xcc   :  { %v130_v15 = vadd.f32 %v206_v13, %v175_v12  ;;  %v150_v16 = vadd.f32 %v212_v14, %v175_v12 }
  0xcd   :  { %v124_v17 = vpop.f32.mrf.mxu0  ;;  %v144_v18 = vpop.f32.mrf.mxu1 }
  0xce   :  { %164 = vst [vmem:[%s318_s3 + $0x8] sm:$0xff] %v130_v15  ;;  %168 = vst [vmem:[%s318_s3 + $0x28] sm:$0xff] %v150_v16  ;;  %v125_v19 = vadd.f32 %v175_v12, %v124_v17  ;;  %v145_v20 = vadd.f32 %v175_v12, %v144_v18 }
  0xcf   :  { %v209_v21 = vpop.f32.mrf.mxu0  ;;  %v215_v22 = vpop.f32.mrf.mxu1 }
  0xd0   :  { %163 = vst [vmem:[%s318_s3] sm:$0xff] %v125_v19  ;;  %167 = vst [vmem:[%s318_s3 + $0x20] sm:$0xff] %v145_v20  ;;  %v140_v23 = vadd.f32 %v209_v21, %v175_v12  ;;  %v160_v24 = vadd.f32 %v215_v22, %v175_v12 }
  0xd1   :  { %v134_v25 = vpop.f32.mrf.mxu0  ;;  %v154_v26 = vpop.f32.mrf.mxu1 }
  0xd2   :  { %166 = vst [vmem:[%s318_s3 + $0x18] sm:$0xff] %v140_v23  ;;  %170 = vst [vmem:[%s318_s3 + $0x38] sm:$0xff] %v160_v24  ;;  %v135_v27 = vadd.f32 %v175_v12, %v134_v25  ;;  %v155_v28 = vadd.f32 %v175_v12, %v154_v26 }
  0xd4   :  { %165 = vst [vmem:[%s318_s3 + $0x10] sm:$0xff] %v135_v27  ;;  %169 = vst [vmem:[%s318_s3 + $0x30] sm:$0xff] %v155_v28 }

// kernel: forward.9
= control target key start
LH: loop header
LB: loop body
LE: loop exit
PB: predicated region body
PF: predicated region fallthrough
CT: control target
= control target key end

     0   :  { %vm33_vm0 = vcmask 261120   ;;  %s355_s1 = inlined_call_operand.vmem [shape: f32[32,32], index: 1, kind: input, shape index: {}]   ;;  %s356_s0 = inlined_call_operand.vmem [shape: f32[64,32], index: 0, kind: input, shape index: {}]   ;;  %s357_s2 = inlined_call_operand.vmem [shape: f32[1,32], index: 2, kind: input, shape index: {}]   ;;  %s358_s3 = inlined_call_operand.vmem [shape: f32[64,32], index: 3, kind: output, shape index: {}]  }
   0x1   :  { %v25_v0 = vld [vmem:[%s355_s1 + $0x18] sm:$0xff]  ;;  %v24_v1 = vld [vmem:[%s355_s1 + $0x10] sm:$0xff]  ;;  %v23_v2 = vld [vmem:[%s355_s1 + $0x8] sm:$0xff] }
   0x2   :  { %212 = vmatprep.subr.mxu0 %v25_v0  ;;  %232 = vmatprep.subr.mxu1 %v25_v0  ;;  %v22_v3 = vld [vmem:[%s355_s1] sm:$0xff]  ;;  %v15_v6 = vld [vmem:[%s356_s0 + $0x8] sm:$0xff]  ;;  %v16_v8 = vld [vmem:[%s356_s0 + $0x10] sm:$0xff] }
   0x3   :  { %213 = vmatpush3.msra.mxu0 %v25_v0  ;;  %236 = vmatpush3.msra.mxu1 %v25_v0  ;;  %v14_v4 = vld [vmem:[%s356_s0] sm:$0xff]  ;;  %v19_v7 = vld [vmem:[%s356_s0 + $0x28] sm:$0xff]  ;;  %v20_v9 = vld [vmem:[%s356_s0 + $0x30] sm:$0xff] }
   0x4   :  { %214 = vmatprep.subr.mxu0 %v24_v1  ;;  %233 = vmatprep.subr.mxu1 %v24_v1  ;;  %v18_v5 = vld [vmem:[%s356_s0 + $0x20] sm:$0xff]  ;;  %v17_v10 = vld [vmem:[%s356_s0 + $0x18] sm:$0xff] }
   0x5   :  { %215 = vmatpush3.msra.mxu0 %v24_v1  ;;  %237 = vmatpush3.msra.mxu1 %v24_v1  ;;  %v21_v11 = vld [vmem:[%s356_s0 + $0x38] sm:$0xff]  ;;  %v191_v12 = vld [vmem:[%s357_s2] ss:$0 sm:$0xff] }
   0x6   :  { %216 = vmatprep.subr.mxu0 %v23_v2  ;;  %234 = vmatprep.subr.mxu1 %v23_v2 }
   0x7   :  { %217 = vmatpush3.msra.mxu0 %v23_v2  ;;  %238 = vmatpush3.msra.mxu1 %v23_v2 }
   0x8   :  { %218 = vmatprep.subr.mxu0 %v22_v3  ;;  %235 = vmatprep.subr.mxu1 %v22_v3 }
   0x9   :  { %219 = vmatpush3.msra.mxu0 %v22_v3  ;;  %239 = vmatpush3.msra.mxu1 %v22_v3 }
   0xa   :  { %220 = vmatprep.mubr.msk.f32.mxu0 %vm33_vm0, %v14_v4  ;;  %226 = vmatprep.mubr.msk.f32.mxu1 %vm33_vm0, %v18_v5 }
   0xb   :  { %221 = vmatmul.mubr.msk.f32.vlgmr.msra.gmra.mxu0 %vm33_vm0, %v15_v6  ;;  %227 = vmatmul.mubr.msk.f32.vlgmr.msra.gmra.mxu1 %vm33_vm0, %v19_v7 }
   0xc   :  { %223 = vmatprep.mubr.msk.f32.mxu0 %vm33_vm0, %v16_v8  ;;  %229 = vmatprep.mubr.msk.f32.mxu1 %vm33_vm0, %v20_v9 }
   0xf   :  { %224 = vmatmul.mubr.msk.f32.gmra.mxu0 %vm33_vm0, %v17_v10  ;;  %230 = vmatmul.mubr.msk.f32.gmra.mxu1 %vm33_vm0, %v21_v11 }
  0xcb   :  { %v222_v13 = vpop.f32.mrf.mxu0  ;;  %v228_v14 = vpop.f32.mrf.mxu1 }
  0xcc   :  { %v130_v15 = vadd.f32 %v222_v13, %v191_v12  ;;  %v150_v16 = vadd.f32 %v228_v14, %v191_v12 }
  0xcd   :  { %v124_v17 = vpop.f32.mrf.mxu0  ;;  %v144_v18 = vpop.f32.mrf.mxu1 }
  0xce   :  { %240 = vtanh.f32 %v130_v15  ;;  %v125_v19 = vadd.f32 %v191_v12, %v124_v17  ;;  %v145_v20 = vadd.f32 %v191_v12, %v144_v18 }
  0xcf   :  { %242 = vtanh.f32 %v150_v16  ;;  %v225_v21 = vpop.f32.mrf.mxu0  ;;  %v231_v22 = vpop.f32.mrf.mxu1 }
  0xd0   :  { %244 = vtanh.f32 %v125_v19  ;;  %v140_v23 = vadd.f32 %v225_v21, %v191_v12  ;;  %v160_v24 = vadd.f32 %v231_v22, %v191_v12 }
  0xd1   :  { %246 = vtanh.f32 %v145_v20  ;;  %v134_v25 = vpop.f32.mrf.mxu0  ;;  %v154_v26 = vpop.f32.mrf.mxu1 }
  0xd2   :  { %248 = vtanh.f32 %v140_v23  ;;  %v135_v27 = vadd.f32 %v191_v12, %v134_v25  ;;  %v155_v28 = vadd.f32 %v191_v12, %v154_v26 }
  0xd3   :  { %250 = vtanh.f32 %v160_v24 }
  0xd4   :  { %252 = vtanh.f32 %v135_v27 }
  0xd5   :  { %254 = vtanh.f32 %v155_v28 }
  0xdb   :  { %v241_v29 = vpop.eup %240 }
  0xdc   :  { %v243_v30 = vpop.eup %242  ;;  %v172_v31 = vmul.f32 10.0, %v241_v29 }
  0xdd   :  { %v245_v32 = vpop.eup %244  ;;  %v176_v33 = vmul.f32 10.0, %v243_v30 }
  0xde   :  { %v247_v34 = vpop.eup %246  ;;  %180 = vst.msk [vmem:[%s358_s3 + $0x8] sm:$0xff] %vm33_vm0, %v172_v31  ;;  %v171_v35 = vmul.f32 10.0, %v245_v32 }
  0xdf   :  { %v249_v36 = vpop.eup %248  ;;  %184 = vst.msk [vmem:[%s358_s3 + $0x28] sm:$0xff] %vm33_vm0, %v176_v33  ;;  %v175_v37 = vmul.f32 10.0, %v247_v34 }
  0xe0   :  { %v251_v38 = vpop.eup %250  ;;  %179 = vst.msk [vmem:[%s358_s3] sm:$0xff] %vm33_vm0, %v171_v35  ;;  %v174_v39 = vmul.f32 10.0, %v249_v36 }
  0xe1   :  { %v253_v40 = vpop.eup %252  ;;  %183 = vst.msk [vmem:[%s358_s3 + $0x20] sm:$0xff] %vm33_vm0, %v175_v37  ;;  %v178_v41 = vmul.f32 10.0, %v251_v38 }
  0xe2   :  { %v255_v42 = vpop.eup %254  ;;  %182 = vst.msk [vmem:[%s358_s3 + $0x18] sm:$0xff] %vm33_vm0, %v174_v39  ;;  %v173_v43 = vmul.f32 10.0, %v253_v40 }
  0xe3   :  { %186 = vst.msk [vmem:[%s358_s3 + $0x38] sm:$0xff] %vm33_vm0, %v178_v41  ;;  %v177_v44 = vmul.f32 10.0, %v255_v42 }
  0xe4   :  { %181 = vst.msk [vmem:[%s358_s3 + $0x10] sm:$0xff] %vm33_vm0, %v173_v43 }
  0xe5   :  { %185 = vst.msk [vmem:[%s358_s3 + $0x30] sm:$0xff] %vm33_vm0, %v177_v44 }

</bundles_post_ra>
